<compile_context>
chip_gen: v5e
topology: v5e:2x2
jax: 0.10.0
libtpu: 0.0.40
codegen_flags: <defaults>
</compile_context>

<pallas_src>
import math

import jax
import jax.numpy as jnp
from jax.experimental import pallas as pl
from jax.experimental.pallas import tpu as pltpu


# ----------------------------------------------------------------------------
# Pallas kernel: one (tm, K) x (K, tn) matmul tile + bias add.
# ----------------------------------------------------------------------------
def _linear_kernel(x_ref, w_ref, b_ref, o_ref):
    acc = jnp.dot(x_ref[...], w_ref[...], preferred_element_type=jnp.float32)
    o_ref[...] = (acc + b_ref[...]).astype(o_ref.dtype)


def _round_up(v, m):
    return (v + m - 1) // m * m


# ----------------------------------------------------------------------------
# Forward wrapper: EncoderLinear.forward(X) -> (Linear(X), zeros(1))
# ----------------------------------------------------------------------------
def encoder_linear_forward(X, W, b, *, tile_m=256, tile_n=512,
                           param_dtype=jnp.float32):
    """X: (..., in_dim); W: (out_dim, in_dim) [PyTorch layout]; b: (out_dim,)."""
    orig_shape = X.shape
    in_dim = orig_shape[-1]
    out_dim = W.shape[0]

    x2 = X.reshape(-1, in_dim).astype(jnp.float32)
    M = x2.shape[0]

    # Lane/sublane-dense padding: K and N -> multiples of 128 lanes, row tile
    # -> multiple of 8 sublanes.  Tile sizes are chosen first, then the padded
    # extents are rounded up to a whole number of tiles, so every BlockSpec
    # satisfies the (8, 128) divisibility rule and stores stay unmasked.
    K_pad = _round_up(in_dim, 128)
    tm = min(tile_m, _round_up(M, 8))          # multiple of 8
    M_pad = _round_up(M, tm)
    tn = min(tile_n, _round_up(out_dim, 128))  # multiple of 128
    N_pad = _round_up(out_dim, tn)

    x_p = jnp.pad(x2, ((0, M_pad - M), (0, K_pad - in_dim))).astype(param_dtype)
    w_io = jnp.pad(jnp.asarray(W, jnp.float32).T,
                   ((0, K_pad - in_dim), (0, N_pad - out_dim))).astype(param_dtype)
    b_p = jnp.pad(jnp.asarray(b, jnp.float32).reshape(1, out_dim),
                  ((0, 0), (0, N_pad - out_dim)))

    grid = (M_pad // tm, N_pad // tn)          # N innermost: X tile DMA reused
    y_p = pl.pallas_call(
        _linear_kernel,
        out_shape=jax.ShapeDtypeStruct((M_pad, N_pad), jnp.float32),
        grid_spec=pltpu.PrefetchScalarGridSpec(
            num_scalar_prefetch=0,
            grid=grid,
            in_specs=[
                pl.BlockSpec((tm, K_pad), lambda i, j: (i, 0)),   # row tile of X
                pl.BlockSpec((K_pad, tn), lambda i, j: (0, j)),   # weight column tile
                pl.BlockSpec((1, tn), lambda i, j: (0, j)),       # bias slice
            ],
            out_specs=pl.BlockSpec((tm, tn), lambda i, j: (i, j)),
        ),
        compiler_params=pltpu.CompilerParams(
            dimension_semantics=("parallel", "parallel"),
        ),
    )(x_p, w_io, b_p)

    y = y_p[:M, :out_dim].reshape(*orig_shape[:-1], out_dim)
    entropy = jnp.zeros((1,), jnp.float32)      # tc.zeros(1) in the reference
    return y, entropy


# ----------------------------------------------------------------------------
# Deterministic parameter init mimicking PyTorch's default nn.Linear init.
# ----------------------------------------------------------------------------
def init_linear_params(in_dim, out_dim, seed=0):
    kw, kb = jax.random.split(jax.random.PRNGKey(seed))
    bound = 1.0 / math.sqrt(in_dim)
    W = jax.random.uniform(kw, (out_dim, in_dim), jnp.float32, -bound, bound)
    b = jax.random.uniform(kb, (out_dim,), jnp.float32, -bound, bound)
    return W, b


# ----------------------------------------------------------------------------
if __name__ == "__main__":
    # Small shapes consistent with the module: X is (batch=2, seq=8, in_dim=32)
    # -> output (2, 8, out_dim=64).
    in_dim, out_dim = 32, 64
    batch, seq = 2, 8

    key_x, _ = jax.random.split(jax.random.PRNGKey(0))
    X = jax.random.normal(key_x, (batch, seq, in_dim), jnp.float32)
    W, b = init_linear_params(in_dim, out_dim, seed=0)

    y, entropy = encoder_linear_forward(X, W, b)
    jax.block_until_ready((y, entropy))

    # Pure-JAX reference of nn.Linear: X @ W.T + b
    y_ref = jnp.einsum('bsi,oi->bso', X, W) + b

    assert y.shape == (batch, seq, out_dim)
    assert entropy.shape == (1,)
    assert bool(jnp.all(entropy == 0.0))
    assert jnp.allclose(y, y_ref, atol=1e-5, rtol=1e-5), float(
        jnp.max(jnp.abs(y - y_ref)))
    print("KERNEL_OK")
</pallas_src>

<mosaic_0001>
module attributes {stable_mosaic.version = 11 : i64} {
  func.func @_linear_kernel(%arg0: i32, %arg1: i32, %arg2: memref<16x128xf32, #tpu.memory_space<vmem>>, %arg3: memref<128x128xf32, #tpu.memory_space<vmem>>, %arg4: memref<1x128xf32, #tpu.memory_space<vmem>>, %arg5: memref<16x128xf32, #tpu.memory_space<vmem>>) attributes {dimension_semantics = [#tpu.dimension_semantics<parallel>, #tpu.dimension_semantics<parallel>], iteration_bounds = array<i64: 1, 1>, scalar_prefetch = 0 : i64, scratch_operands = 0 : i64, tpu.core_type = #tpu.core_type<tc>, window_params = [{transform_indices = @transform_0, window_bounds = array<i64: 16, 128>}, {transform_indices = @transform_1, window_bounds = array<i64: 128, 128>}, {transform_indices = @transform_2, window_bounds = array<i64: 1, 128>}, {transform_indices = @transform_3, window_bounds = array<i64: 16, 128>}]} {
    %c0 = arith.constant 0 : index
    %c0_0 = arith.constant 0 : index
    %0 = vector.load %arg2[%c0, %c0_0] : memref<16x128xf32, #tpu.memory_space<vmem>>, vector<16x128xf32>
    %c0_1 = arith.constant 0 : index
    %c0_2 = arith.constant 0 : index
    %1 = vector.load %arg3[%c0_1, %c0_2] : memref<128x128xf32, #tpu.memory_space<vmem>>, vector<128x128xf32>
    %cst = arith.constant dense<0.000000e+00> : vector<16x128xf32>
    %2 = tpu.matmul %0, %1, %cst {dimension_numbers = #tpu.dot_dimension_numbers<[1], [0], [0], [1], [0, 0, 1, 1], [], []>} : vector<16x128xf32>, vector<128x128xf32>, vector<16x128xf32> -> vector<16x128xf32>
    %c0_3 = arith.constant 0 : index
    %c0_4 = arith.constant 0 : index
    %3 = vector.load %arg4[%c0_3, %c0_4] : memref<1x128xf32, #tpu.memory_space<vmem>>, vector<1x128xf32>
    %4 = vector.broadcast %3 : vector<1x128xf32> to vector<16x128xf32>
    %5 = arith.addf %2, %4 : vector<16x128xf32>
    %c0_5 = arith.constant 0 : index
    %c0_6 = arith.constant 0 : index
    %6 = vector.load %arg5[%c0_5, %c0_6] : memref<16x128xf32, #tpu.memory_space<vmem>>, vector<16x128xf32>
    tpu.vector_store %arg5[%c0_5, %c0_6], %5 {strides = array<i32>} : memref<16x128xf32, #tpu.memory_space<vmem>>, vector<16x128xf32>,
    return
  }
  func.func @transform_0(%arg0: i32, %arg1: i32) -> (i32, i32) {
    %c0_i32 = arith.constant 0 : i32
    %c0_i32_0 = arith.constant 0 : i32
    return %arg0, %c0_i32 : i32, i32
  }
  func.func @transform_1(%arg0: i32, %arg1: i32) -> (i32, i32) {
    %c0_i32 = arith.constant 0 : i32
    %c0_i32_0 = arith.constant 0 : i32
    return %c0_i32, %arg1 : i32, i32
  }
  func.func @transform_2(%arg0: i32, %arg1: i32) -> (i32, i32) {
    %c0_i32 = arith.constant 0 : i32
    %c0_i32_0 = arith.constant 0 : i32
    return %c0_i32, %arg1 : i32, i32
  }
  func.func @transform_3(%arg0: i32, %arg1: i32) -> (i32, i32) {
    %c0_i32 = arith.constant 0 : i32
    return %arg0, %arg1 : i32, i32
  }
}

</mosaic_0001>

<bundles_post_ra>
// kernel: tpu_custom_call.1
= control target key start
LH: loop header
LB: loop body
LE: loop exit
PB: predicated region body
PF: predicated region fallthrough
CT: control target
= control target key end

     0   :  { %8 = vsyncpa [#allocation3], 0  ;;  %s260_s0 = inlined_call_operand.hbm [shape: f32[16,128], index: 0, kind: input, shape index: {}]   ;;  %s261_s1 = inlined_call_operand.hbm [shape: f32[128,128], index: 1, kind: input, shape index: {}]   ;;  %s262_s2 = inlined_call_operand.vmem [shape: f32[1,128], index: 2, kind: input, shape index: {}]   ;;  %s263_s3 = inlined_call_operand.hbm [shape: f32[16,128], index: 3, kind: output, shape index: {}]  }
   0x1   :  { %9 = vsyncpa [#allocation6], 0 }
   0x2   :  { %10 = vsyncpa [#allocation4], 0  ;;  %s15_s14 = sshll.u32 %s260_s0, 4  ;;  %s214_s15 = smov [#allocation2]   ;;  %s16_s14 = int_to_ptr.hbm [resolvable:$true] %s15_s14 }
   0x3   :  { %s17_s16 = sshll.u32 %s214_s15, 4  ;;  %s28_s19 = sshll.u32 %s261_s1, 4  ;;  %s18_s16 = int_to_ptr.vmem [resolvable:$true] %s17_s16  ;;  %s29_s19 = int_to_ptr.hbm [resolvable:$true] %s28_s19 }
   0x4   :  { %s215_s20 = smov 128   ;;  %s216_s21 = smov 8  }
   0x5   :  { %23 = dma.hbm_to_vmem [thread:$0]  %s16_s14, 256, %s18_s16, [#allocation3], %s215_s20, %s215_s20, %s216_s21  }
   0x6   :  { %s217_s22 = smov [#allocation5]  }
   0x7   :  { %s30_s23 = sshll.u32 %s217_s22, 4  ;;  %s31_s23 = int_to_ptr.vmem [resolvable:$true] %s30_s23 }
   0x8   :  { %36 = dma.hbm_to_vmem [thread:$0]  %s29_s19, 2048, %s31_s23, [#allocation6], %s215_s20, %s215_s20, %s216_s21  }
   0x9   :  { %208 = dma.done.wait [#allocation3], 256  }
   0xa   :  { %209 = vsyncadd [#allocation3], 4294967040 }
   0xb   :  { %210 = dma.done.wait [#allocation6], 2048  }
   0xc   :  { %211 = vsyncadd [#allocation6], 4294965248  ;;  %v64_v0 = vld [vmem:[#allocation5 + $0x78] sm:$0xff]  ;;  %v63_v1 = vld [vmem:[#allocation5 + $0x70] sm:$0xff]  ;;  %s218_s24 = smov [#allocation7]   ;;  %s100_s28 = sshll.u32 %s263_s3, 4  ;;  %s101_s28 = int_to_ptr.hbm [resolvable:$true] %s100_s28 }
   0xd   :  { %69 = vmatpush.msra.mxu0 %v64_v0  ;;  %114 = vmatpush.msra.mxu1 %v64_v0  ;;  %v62_v2 = vld [vmem:[#allocation5 + $0x68] sm:$0xff]  ;;  %v61_v3 = vld [vmem:[#allocation5 + $0x60] sm:$0xff]  ;;  %v60_v4 = vld [vmem:[#allocation5 + $0x58] sm:$0xff]  ;;  %s98_s25 = sshll.u32 %s218_s24, 4  ;;  %s99_s25 = int_to_ptr.vmem [resolvable:$true] %s98_s25 }
   0xe   :  { %v59_v5 = vld [vmem:[#allocation5 + $0x50] sm:$0xff]  ;;  %v58_v6 = vld [vmem:[#allocation5 + $0x48] sm:$0xff]  ;;  %v57_v7 = vld [vmem:[#allocation5 + $0x40] sm:$0xff] }
   0xf   :  { %70 = vmatpush.msra.mxu0 %v63_v1  ;;  %115 = vmatpush.msra.mxu1 %v63_v1  ;;  %v56_v8 = vld [vmem:[#allocation5 + $0x38] sm:$0xff]  ;;  %v55_v9 = vld [vmem:[#allocation5 + $0x30] sm:$0xff]  ;;  %v54_v10 = vld [vmem:[#allocation5 + $0x28] sm:$0xff] }
  0x10   :  { %v53_v11 = vld [vmem:[#allocation5 + $0x20] sm:$0xff]  ;;  %v52_v12 = vld [vmem:[#allocation5 + $0x18] sm:$0xff]  ;;  %v51_v13 = vld [vmem:[#allocation5 + $0x10] sm:$0xff] }
  0x11   :  { %71 = vmatpush.msra.mxu0 %v62_v2  ;;  %116 = vmatpush.msra.mxu1 %v62_v2  ;;  %v50_v14 = vld [vmem:[#allocation5 + $0x8] sm:$0xff]  ;;  %v49_v15 = vld [vmem:[#allocation5] sm:$0xff]  ;;  %v47_v16 = vld [vmem:[#allocation2] sm:$0xff] }
  0x12   :  { %v48_v17 = vld [vmem:[#allocation2 + $0x8] sm:$0xff]  ;;  %v135_v18 = vld [vmem:[%s262_s2] ss:$0 sm:$0xff] }
  0x13   :  { %72 = vmatpush.msra.mxu0 %v61_v3  ;;  %117 = vmatpush.msra.mxu1 %v61_v3 }
  0x15   :  { %73 = vmatpush.msra.mxu0 %v60_v4  ;;  %118 = vmatpush.msra.mxu1 %v60_v4 }
  0x17   :  { %74 = vmatpush.msra.mxu0 %v59_v5  ;;  %119 = vmatpush.msra.mxu1 %v59_v5 }
  0x19   :  { %75 = vmatpush.msra.mxu0 %v58_v6  ;;  %120 = vmatpush.msra.mxu1 %v58_v6 }
  0x1b   :  { %76 = vmatpush.msra.mxu0 %v57_v7  ;;  %121 = vmatpush.msra.mxu1 %v57_v7 }
  0x1d   :  { %77 = vmatpush.msra.mxu0 %v56_v8  ;;  %122 = vmatpush.msra.mxu1 %v56_v8 }
  0x1f   :  { %78 = vmatpush.msra.mxu0 %v55_v9  ;;  %123 = vmatpush.msra.mxu1 %v55_v9 }
  0x21   :  { %79 = vmatpush.msra.mxu0 %v54_v10  ;;  %124 = vmatpush.msra.mxu1 %v54_v10 }
  0x23   :  { %80 = vmatpush.msra.mxu0 %v53_v11  ;;  %125 = vmatpush.msra.mxu1 %v53_v11 }
  0x25   :  { %81 = vmatpush.msra.mxu0 %v52_v12  ;;  %126 = vmatpush.msra.mxu1 %v52_v12 }
  0x27   :  { %82 = vmatpush.msra.mxu0 %v51_v13  ;;  %127 = vmatpush.msra.mxu1 %v51_v13 }
  0x29   :  { %83 = vmatpush.msra.mxu0 %v50_v14  ;;  %128 = vmatpush.msra.mxu1 %v50_v14 }
  0x2b   :  { %84 = vmatpush.msra.mxu0 %v49_v15  ;;  %129 = vmatpush.msra.mxu1 %v49_v15 }
  0x2c   :  { %85 = vmatmul.f32.vlgmr.msra.gmra.mxu0 %v47_v16  ;;  %88 = vmatmul.f32.vlgmr.msra.gmra.mxu1 %v48_v17 }
  0xa9   :  { %v86_v19 = vpop.f32.mrf.mxu0  ;;  %v89_v20 = vpop.f32.mrf.mxu1 }
  0xaa   :  { %v87_v21 = vadd.f32 %v135_v18, %v86_v19  ;;  %v90_v22 = vadd.f32 %v135_v18, %v89_v20 }
  0xac   :  { %92 = vst [vmem:[#allocation7] sm:$0xff] %v87_v21 }
  0xad   :  { %93 = vst [vmem:[#allocation7 + $0x8] sm:$0xff] %v90_v22 }
  0xae   :  { %106 = dma.vmem_to_hbm [thread:$0]  %s99_s25, 256, %s101_s28, [#allocation4], %s215_s20, %s215_s20, %s216_s21  }
  0xaf   :  { %212 = dma.done.wait [#allocation4], 256  }
  0xb0   :  { %213 = vsyncadd [#allocation4], 4294967040 }
  0xb1   :  { %111 = vsyncpa [#allocation3], 1 }
  0xb2   :  { %112 = vsyncpa [#allocation6], 1 }
  0xb3   :  { %113 = vsyncpa [#allocation4], 1 }

</bundles_post_ra>
